<compile_context>
chip_gen: v6e
topology: v6e:2x2x1
jax: 0.10.0
libtpu: 0.0.40
codegen_flags: <defaults>
</compile_context>

<pallas_src>
import jax
import jax.numpy as jnp
from jax.experimental import pallas as pl
from jax.experimental.pallas import tpu as pltpu


def node_model_kernel(col_ref, he_ref, x_ref, batch_ref, u_ref,
                      w1b_ref, w2a_x_ref, w2a_m1_ref, w2a_u_ref, w2b_ref,
                      b_ref, out_ref, acc_ref):
    """Grid = (node_tiles, edge_tiles); the edge axis is the reduction axis."""
    e = pl.program_id(1)
    TN = acc_ref.shape[0]
    TE = he_ref.shape[0]

    @pl.when(e == 0)
    def _init():
        acc_ref[...] = jnp.zeros_like(acc_ref)

    # scatter_sum over this edge block as a one-hot MXU matmul:
    #   p_col[t, j] = 1  iff  col[j] == node_tile_start + t
    # One-hot values are exact in bf16; accumulate in f32 (bf16 MXU path).
    n0 = pl.program_id(0) * TN
    node_ids = jax.lax.broadcasted_iota(jnp.int32, (TN, TE), 0) + n0
    p_col = (node_ids == col_ref[...]).astype(jnp.float32).astype(jnp.bfloat16)
    acc_ref[...] += jnp.dot(p_col, he_ref[...],
                            preferred_element_type=jnp.float32)

    @pl.when(e == pl.num_programs(1) - 1)
    def _finalize():
        hid1 = acc_ref.shape[1]
        out1 = w1b_ref.shape[1]
        hid2 = w2a_x_ref.shape[1]
        out2 = w2b_ref.shape[1]
        B = u_ref.shape[0]
        b = b_ref[...]                                   # (4, maxw) packed biases

        # node_mlp_1 (lin1 was reassociated to the edge level in the wrapper).
        h1 = jnp.maximum(acc_ref[...] + b[0:1, :hid1], 0.0)
        m1 = jnp.dot(h1, w1b_ref[...],
                     preferred_element_type=jnp.float32) + b[1:2, :out1]

        # u[batch] gather via exact one-hot (B is tiny here).
        # TODO(synk): for large graph counts B, switch to a scalar-prefetch
        #             path (SMEM batch ids + pl.ds row loads) per review.
        oh_b = (jax.lax.broadcasted_iota(jnp.int32, (TN, B), 1)
                == batch_ref[...]).astype(jnp.float32)
        ub = jnp.dot(oh_b, u_ref[...], preferred_element_type=jnp.float32)

        # node_mlp_2.  Kept as three lane-aligned matmuls against split w2a.
        # TODO(synk): merge into one cat2 @ w2a (single MXU push) once
        #             minor-dim concat of sub-128-lane operands is verified
        #             on the target jaxlib; modest win per review.
        h2 = jnp.maximum(
            jnp.dot(x_ref[...], w2a_x_ref[...], preferred_element_type=jnp.float32)
            + jnp.dot(m1, w2a_m1_ref[...], preferred_element_type=jnp.float32)
            + jnp.dot(ub, w2a_u_ref[...], preferred_element_type=jnp.float32)
            + b[2:3, :hid2], 0.0)
        out_ref[...] = (jnp.dot(h2, w2b_ref[...],
                                preferred_element_type=jnp.float32)
                        + b[3:4, :out2])


def _round_up(a, m):
    return (a + m - 1) // m * m


def node_model_ml2(x, edge_index, edge_attr, u, batch, params):
    """Pallas forward of NodeModel_ml2 (eval-mode semantics; dropout = identity)."""
    # TODO(synk): training-mode dropout RNG not implemented (identity only).
    x = x.astype(jnp.float32)
    edge_attr = edge_attr.astype(jnp.float32)
    u = u.astype(jnp.float32)

    N, Fx = x.shape
    E, _ = edge_attr.shape
    B, Fu = u.shape

    w1a, w1b = params["w1a"], params["w1b"]
    w2a, w2b = params["w2a"], params["w2b"]
    hid1, out1 = w1a.shape[1], w1b.shape[1]
    hid2, out2 = w2a.shape[1], w2b.shape[1]

    row = edge_index[0].astype(jnp.int32)
    col = edge_index[1].astype(jnp.int32)

    # ---- hoisted, tile-invariant edge-level work (one cheap XLA pass) ----
    # scatter_sum(cat([x[row], e])) @ W1a == scatter_sum(cat([x[row], e]) @ W1a)
    # he is cast to bf16 once here (halves its HBM/VMEM traffic; the one-hots
    # and accumulation stay exact, so error is just bf16 rounding of he).
    he = (jnp.concatenate([x[row], edge_attr], axis=1) @ w1a).astype(jnp.bfloat16)

    # ---- tiling ----
    # Node tile: 128 fits v7x's 64 MiB VMEM comfortably and is fine on
    # v5e/v6e; for tiny N shrink the tile but keep >= 2 grid steps so the
    # "parallel" axis can shard across both v7x TensorCores.
    tile_n = min(128, _round_up(max(pl.cdiv(N, 2), 8), 8))
    grid_n = max(pl.cdiv(N, tile_n), 2)
    n_pad = grid_n * tile_n

    # Edge tile: lane-aligned (multiple of 128); bounds the (TN, TE) one-hot
    # and lets the BlockSpec pipeline prefetch col/he blocks for large E.
    tile_e = 512 if E >= 1024 else _round_up(max(E, 1), 128)
    grid_e = pl.cdiv(E, tile_e)
    e_pad = grid_e * tile_e

    x_p = jnp.pad(x, ((0, n_pad - N), (0, 0)))
    batch_p = jnp.pad(batch.astype(jnp.int32), (0, n_pad - N)).reshape(n_pad, 1)
    col_p = jnp.pad(col.reshape(1, E), ((0, 0), (0, e_pad - E)),
                    constant_values=-1)                  # -1 never matches a node
    he_p = jnp.pad(he, ((0, e_pad - E), (0, 0)))

    # Split w2a along its input rows (x | m1 | u[batch]) -> no in-kernel concat.
    w2a_x = w2a[:Fx]
    w2a_m1 = w2a[Fx:Fx + out1]
    w2a_u = w2a[Fx + out1:]

    # Pack the four bias rows into one small (4, maxw) block (single DMA).
    maxw = max(hid1, out1, hid2, out2)

    def _pad_b(bv):
        bv = bv.reshape(1, -1)
        return jnp.pad(bv, ((0, 0), (0, maxw - bv.shape[1])))

    b_pack = jnp.concatenate(
        [_pad_b(params["b1a"]), _pad_b(params["b1b"]),
         _pad_b(params["b2a"]), _pad_b(params["b2b"])], axis=0)

    args = (col_p, he_p, x_p, batch_p, u,
            w1b, w2a_x, w2a_m1, w2a_u, w2b, b_pack)

    in_specs = [
        pl.BlockSpec((1, tile_e), lambda i, e: (0, e)),       # col edge block
        pl.BlockSpec((tile_e, hid1), lambda i, e: (e, 0)),    # he edge block (bf16)
        pl.BlockSpec((tile_n, Fx), lambda i, e: (i, 0)),      # x node tile
        pl.BlockSpec((tile_n, 1), lambda i, e: (i, 0)),       # batch node tile
        pl.BlockSpec((B, Fu), lambda i, e: (0, 0)),           # u (whole)
        pl.BlockSpec((hid1, out1), lambda i, e: (0, 0)),      # w1b
        pl.BlockSpec((Fx, hid2), lambda i, e: (0, 0)),        # w2a_x
        pl.BlockSpec((out1, hid2), lambda i, e: (0, 0)),      # w2a_m1
        pl.BlockSpec((Fu, hid2), lambda i, e: (0, 0)),        # w2a_u
        pl.BlockSpec((hid2, out2), lambda i, e: (0, 0)),      # w2b
        pl.BlockSpec((4, maxw), lambda i, e: (0, 0)),         # packed biases
    ]
    out_specs = pl.BlockSpec((tile_n, out2), lambda i, e: (i, 0))

    flops = (2 * n_pad * e_pad * hid1                          # scatter contraction
             + 2 * n_pad * (hid1 * out1 + Fx * hid2 + out1 * hid2
                            + Fu * hid2 + hid2 * out2 + B * Fu))
    bytes_accessed = (4 * (x_p.size + batch_p.size + col_p.size * grid_n
                           + u.size + w1b.size + w2a.size + w2b.size
                           + b_pack.size + n_pad * out2)
                      + 2 * he_p.size * grid_n)

    out = pl.pallas_call(
        node_model_kernel,
        grid=(grid_n, grid_e),
        in_specs=in_specs,
        out_specs=out_specs,
        out_shape=jax.ShapeDtypeStruct((n_pad, out2), jnp.float32),
        scratch_shapes=[pltpu.VMEM((tile_n, hid1), jnp.float32)],
        compiler_params=pltpu.CompilerParams(
            dimension_semantics=("parallel", "arbitrary"),
            vmem_limit_bytes=48 * 1024 * 1024),
        cost_estimate=pl.CostEstimate(flops=flops, transcendentals=0,
                                      bytes_accessed=bytes_accessed),
    )(*args)
    return out[:N]


def init_params(key, in1, hid1, out1, in2, hid2, out2):
    """Deterministic PyTorch-Linear-style init (uniform +-1/sqrt(fan_in))."""
    def lin(k, fin, fout):
        kw, kb = jax.random.split(k)
        bound = 1.0 / jnp.sqrt(jnp.float32(fin))
        w = jax.random.uniform(kw, (fin, fout), jnp.float32, -bound, bound)
        b = jax.random.uniform(kb, (1, fout), jnp.float32, -bound, bound)
        return w, b
    k1, k2, k3, k4 = jax.random.split(key, 4)
    w1a, b1a = lin(k1, in1, hid1)
    w1b, b1b = lin(k2, hid1, out1)
    w2a, b2a = lin(k3, in2, hid2)
    w2b, b2b = lin(k4, hid2, out2)
    return dict(w1a=w1a, b1a=b1a, w1b=w1b, b1b=b1b,
                w2a=w2a, b2a=b2a, w2b=w2b, b2b=b2b)


def reference(x, edge_index, edge_attr, u, batch, p):
    """Pure-JAX f32 reference matching the PyTorch forward (eval mode)."""
    row, col = edge_index[0], edge_index[1]
    ef = jnp.concatenate([x[row], edge_attr], axis=1)
    agg = jnp.zeros((x.shape[0], ef.shape[1]), jnp.float32).at[col].add(ef)
    h1 = jnp.maximum(agg @ p["w1a"] + p["b1a"], 0.0)
    m1 = h1 @ p["w1b"] + p["b1b"]
    cat2 = jnp.concatenate([x, m1, u[batch]], axis=1)
    h2 = jnp.maximum(cat2 @ p["w2a"] + p["b2a"], 0.0)
    return h2 @ p["w2b"] + p["b2b"]


if __name__ == "__main__":
    key = jax.random.PRNGKey(0)
    N, E, B = 8, 16, 2           # nodes, edges, graphs
    Fx, Fe, Fu = 4, 4, 4         # node / edge / global feature dims

    in1, hid1, out1 = Fx + Fe, 16, 8            # node_mlp_1 dims
    in2, hid2, out2 = Fx + out1 + Fu, 32, 8     # node_mlp_2 dims

    k1, k2, k3, k4, kp = jax.random.split(key, 5)
    x = jax.random.normal(k1, (N, Fx), jnp.float32)
    edge_index = jax.random.randint(k2, (2, E), 0, N, jnp.int32)
    edge_attr = jax.random.normal(k3, (E, Fe), jnp.float32)
    u = jax.random.normal(k4, (B, Fu), jnp.float32)
    batch = jnp.concatenate([jnp.zeros(N // 2, jnp.int32),
                             jnp.ones(N - N // 2, jnp.int32)])

    params = init_params(kp, in1, hid1, out1, in2, hid2, out2)

    out = node_model_ml2(x, edge_index, edge_attr, u, batch, params)
    jax.block_until_ready(out)

    ref = reference(x, edge_index, edge_attr, u, batch, params)
    assert out.shape == (N, out2)
    # bf16 rounding of the edge-level activations `he` bounds the error far
    # below this tolerance at these scales (one-hots + accumulation stay f32).
    assert jnp.allclose(out, ref, atol=2e-2, rtol=2e-2), "mismatch vs reference"

    print("KERNEL_OK")
</pallas_src>

<mosaic_0001>
module attributes {stable_mosaic.version = 11 : i64} {
  func.func @node_model_kernel(%arg0: i32, %arg1: i32, %arg2: memref<1x128xi32, #tpu.memory_space<vmem>>, %arg3: memref<128x16xbf16, #tpu.memory_space<vmem>>, %arg4: memref<8x4xf32, #tpu.memory_space<vmem>>, %arg5: memref<8x1xi32, #tpu.memory_space<vmem>>, %arg6: memref<2x4xf32, #tpu.memory_space<vmem>>, %arg7: memref<16x8xf32, #tpu.memory_space<vmem>>, %arg8: memref<4x32xf32, #tpu.memory_space<vmem>>, %arg9: memref<8x32xf32, #tpu.memory_space<vmem>>, %arg10: memref<4x32xf32, #tpu.memory_space<vmem>>, %arg11: memref<32x8xf32, #tpu.memory_space<vmem>>, %arg12: memref<4x32xf32, #tpu.memory_space<vmem>>, %arg13: memref<8x8xf32, #tpu.memory_space<vmem>>, %arg14: memref<8x16xf32, #tpu.memory_space<vmem>>) attributes {dimension_semantics = [#tpu.dimension_semantics<parallel>, #tpu.dimension_semantics<arbitrary>], iteration_bounds = array<i64: 2, 1>, scalar_prefetch = 0 : i64, scratch_operands = 1 : i64, tpu.core_type = #tpu.core_type<tc>, window_params = [{transform_indices = @transform_0, window_bounds = array<i64: 1, 128>}, {transform_indices = @transform_1, window_bounds = array<i64: 128, 16>}, {transform_indices = @transform_2, window_bounds = array<i64: 8, 4>}, {transform_indices = @transform_3, window_bounds = array<i64: 8, 1>}, {pipeline_mode = #tpu.pipeline_mode<synchronous>, transform_indices = @transform_4, window_bounds = array<i64: 2, 4>}, {pipeline_mode = #tpu.pipeline_mode<synchronous>, transform_indices = @transform_5, window_bounds = array<i64: 16, 8>}, {pipeline_mode = #tpu.pipeline_mode<synchronous>, transform_indices = @transform_6, window_bounds = array<i64: 4, 32>}, {pipeline_mode = #tpu.pipeline_mode<synchronous>, transform_indices = @transform_7, window_bounds = array<i64: 8, 32>}, {pipeline_mode = #tpu.pipeline_mode<synchronous>, transform_indices = @transform_8, window_bounds = array<i64: 4, 32>}, {pipeline_mode = #tpu.pipeline_mode<synchronous>, transform_indices = @transform_9, window_bounds = array<i64: 32, 8>}, {pipeline_mode = #tpu.pipeline_mode<synchronous>, transform_indices = @transform_10, window_bounds = array<i64: 4, 32>}, {transform_indices = @transform_11, window_bounds = array<i64: 8, 8>}]} {
    %c0_i32 = arith.constant 0 : i32
    %0 = arith.cmpi eq, %arg1, %c0_i32 : i32
    %1 = arith.extui %0 : i1 to i32
    %c0_i32_0 = arith.constant 0 : i32
    %2 = arith.cmpi ne, %1, %c0_i32_0 : i32
    scf.if %2 {
      %cst_10 = arith.constant 0.000000e+00 : f32
      %21 = vector.broadcast %cst_10 : f32 to vector<8x16xf32>
      %c0_11 = arith.constant 0 : index
      %c0_12 = arith.constant 0 : index
      %22 = vector.load %arg14[%c0_11, %c0_12] : memref<8x16xf32, #tpu.memory_space<vmem>>, vector<8x16xf32>
      tpu.vector_store %arg14[%c0_11, %c0_12], %21 {strides = array<i32>} : memref<8x16xf32, #tpu.memory_space<vmem>>, vector<8x16xf32>,
    } else {
    }
    %c8_i32 = arith.constant 8 : i32
    %3 = arith.muli %arg0, %c8_i32 : i32
    %4 = tpu.iota {dimensions = array<i32: 0>} : vector<8x128xi32>
    %5 = vector.broadcast %3 : i32 to vector<8x128xi32>
    %6 = arith.addi %4, %5 : vector<8x128xi32>
    %c0 = arith.constant 0 : index
    %c0_1 = arith.constant 0 : index
    %7 = vector.load %arg2[%c0, %c0_1] : memref<1x128xi32, #tpu.memory_space<vmem>>, vector<1x128xi32>
    %8 = vector.broadcast %7 : vector<1x128xi32> to vector<8x128xi32>
    %9 = arith.cmpi eq, %6, %8 : vector<8x128xi32>
    %10 = arith.extui %9 : vector<8x128xi1> to vector<8x128xi32>
    %11 = arith.sitofp %10 : vector<8x128xi32> to vector<8x128xf32>
    %12 = arith.truncf %11 : vector<8x128xf32> to vector<8x128xbf16>
    %c0_2 = arith.constant 0 : index
    %c0_3 = arith.constant 0 : index
    %13 = vector.load %arg14[%c0_2, %c0_3] : memref<8x16xf32, #tpu.memory_space<vmem>>, vector<8x16xf32>
    %c0_4 = arith.constant 0 : index
    %c0_5 = arith.constant 0 : index
    %14 = vector.load %arg3[%c0_4, %c0_5] : memref<128x16xbf16, #tpu.memory_space<vmem>>, vector<128x16xbf16>
    %cst = arith.constant dense<0.000000e+00> : vector<8x16xf32>
    %15 = tpu.matmul %12, %14, %cst {dimension_numbers = #tpu.dot_dimension_numbers<[1], [0], [0], [1], [0, 0, 1, 1], [], []>} : vector<8x128xbf16>, vector<128x16xbf16>, vector<8x16xf32> -> vector<8x16xf32>
    %16 = arith.addf %13, %15 : vector<8x16xf32>
    %c0_6 = arith.constant 0 : index
    %c0_7 = arith.constant 0 : index
    %17 = vector.load %arg14[%c0_6, %c0_7] : memref<8x16xf32, #tpu.memory_space<vmem>>, vector<8x16xf32>
    tpu.vector_store %arg14[%c0_6, %c0_7], %16 {strides = array<i32>} : memref<8x16xf32, #tpu.memory_space<vmem>>, vector<8x16xf32>,
    %c0_i32_8 = arith.constant 0 : i32
    %18 = arith.cmpi eq, %arg1, %c0_i32_8 : i32
    %19 = arith.extui %18 : i1 to i32
    %c0_i32_9 = arith.constant 0 : i32
    %20 = arith.cmpi ne, %19, %c0_i32_9 : i32
    scf.if %20 {
      %c0_10 = arith.constant 0 : index
      %c0_11 = arith.constant 0 : index
      %21 = vector.load %arg12[%c0_10, %c0_11] : memref<4x32xf32, #tpu.memory_space<vmem>>, vector<4x32xf32>
      %c0_12 = arith.constant 0 : index
      %c0_13 = arith.constant 0 : index
      %22 = vector.load %arg14[%c0_12, %c0_13] : memref<8x16xf32, #tpu.memory_space<vmem>>, vector<8x16xf32>
      %23 = vector.extract_strided_slice %21 {offsets = [0, 0], sizes = [1, 16], strides = [1, 1]} : vector<4x32xf32> to vector<1x16xf32>
      %24 = vector.broadcast %23 : vector<1x16xf32> to vector<8x16xf32>
      %25 = arith.addf %22, %24 : vector<8x16xf32>
      %cst_14 = arith.constant 0.000000e+00 : f32
      %26 = vector.broadcast %cst_14 : f32 to vector<8x16xf32>
      %27 = arith.maximumf %25, %26 : vector<8x16xf32>
      %c0_15 = arith.constant 0 : index
      %c0_16 = arith.constant 0 : index
      %28 = vector.load %arg7[%c0_15, %c0_16] : memref<16x8xf32, #tpu.memory_space<vmem>>, vector<16x8xf32>
      %cst_17 = arith.constant dense<0.000000e+00> : vector<8x8xf32>
      %29 = tpu.matmul %27, %28, %cst_17 {dimension_numbers = #tpu.dot_dimension_numbers<[1], [0], [0], [1], [0, 0, 1, 1], [], []>} : vector<8x16xf32>, vector<16x8xf32>, vector<8x8xf32> -> vector<8x8xf32>
      %30 = vector.extract_strided_slice %21 {offsets = [1, 0], sizes = [1, 8], strides = [1, 1]} : vector<4x32xf32> to vector<1x8xf32>
      %31 = vector.broadcast %30 : vector<1x8xf32> to vector<8x8xf32>
      %32 = arith.addf %29, %31 : vector<8x8xf32>
      %33 = tpu.iota {dimensions = array<i32: 1>} : vector<8x2xi32>
      %c0_18 = arith.constant 0 : index
      %c0_19 = arith.constant 0 : index
      %34 = vector.load %arg5[%c0_18, %c0_19] : memref<8x1xi32, #tpu.memory_space<vmem>>, vector<8x1xi32>
      %35 = vector.broadcast %34 : vector<8x1xi32> to vector<8x2xi32>
      %36 = arith.cmpi eq, %33, %35 : vector<8x2xi32>
      %37 = arith.extui %36 : vector<8x2xi1> to vector<8x2xi32>
      %38 = arith.sitofp %37 : vector<8x2xi32> to vector<8x2xf32>
      %c0_20 = arith.constant 0 : index
      %c0_21 = arith.constant 0 : index
      %39 = vector.load %arg6[%c0_20, %c0_21] : memref<2x4xf32, #tpu.memory_space<vmem>>, vector<2x4xf32>
      %cst_22 = arith.constant dense<0.000000e+00> : vector<8x4xf32>
      %40 = tpu.matmul %38, %39, %cst_22 {dimension_numbers = #tpu.dot_dimension_numbers<[1], [0], [0], [1], [0, 0, 1, 1], [], []>} : vector<8x2xf32>, vector<2x4xf32>, vector<8x4xf32> -> vector<8x4xf32>
      %c0_23 = arith.constant 0 : index
      %c0_24 = arith.constant 0 : index
      %41 = vector.load %arg4[%c0_23, %c0_24] : memref<8x4xf32, #tpu.memory_space<vmem>>, vector<8x4xf32>
      %c0_25 = arith.constant 0 : index
      %c0_26 = arith.constant 0 : index
      %42 = vector.load %arg8[%c0_25, %c0_26] : memref<4x32xf32, #tpu.memory_space<vmem>>, vector<4x32xf32>
      %cst_27 = arith.constant dense<0.000000e+00> : vector<8x32xf32>
      %43 = tpu.matmul %41, %42, %cst_27 {dimension_numbers = #tpu.dot_dimension_numbers<[1], [0], [0], [1], [0, 0, 1, 1], [], []>} : vector<8x4xf32>, vector<4x32xf32>, vector<8x32xf32> -> vector<8x32xf32>
      %c0_28 = arith.constant 0 : index
      %c0_29 = arith.constant 0 : index
      %44 = vector.load %arg9[%c0_28, %c0_29] : memref<8x32xf32, #tpu.memory_space<vmem>>, vector<8x32xf32>
      %cst_30 = arith.constant dense<0.000000e+00> : vector<8x32xf32>
      %45 = tpu.matmul %32, %44, %cst_30 {dimension_numbers = #tpu.dot_dimension_numbers<[1], [0], [0], [1], [0, 0, 1, 1], [], []>} : vector<8x8xf32>, vector<8x32xf32>, vector<8x32xf32> -> vector<8x32xf32>
      %46 = arith.addf %43, %45 : vector<8x32xf32>
      %c0_31 = arith.constant 0 : index
      %c0_32 = arith.constant 0 : index
      %47 = vector.load %arg10[%c0_31, %c0_32] : memref<4x32xf32, #tpu.memory_space<vmem>>, vector<4x32xf32>
      %cst_33 = arith.constant dense<0.000000e+00> : vector<8x32xf32>
      %48 = tpu.matmul %40, %47, %cst_33 {dimension_numbers = #tpu.dot_dimension_numbers<[1], [0], [0], [1], [0, 0, 1, 1], [], []>} : vector<8x4xf32>, vector<4x32xf32>, vector<8x32xf32> -> vector<8x32xf32>
      %49 = arith.addf %46, %48 : vector<8x32xf32>
      %50 = vector.extract_strided_slice %21 {offsets = [2, 0], sizes = [1, 32], strides = [1, 1]} : vector<4x32xf32> to vector<1x32xf32>
      %51 = vector.broadcast %50 : vector<1x32xf32> to vector<8x32xf32>
      %52 = arith.addf %49, %51 : vector<8x32xf32>
      %cst_34 = arith.constant 0.000000e+00 : f32
      %53 = vector.broadcast %cst_34 : f32 to vector<8x32xf32>
      %54 = arith.maximumf %52, %53 : vector<8x32xf32>
      %c0_35 = arith.constant 0 : index
      %c0_36 = arith.constant 0 : index
      %55 = vector.load %arg11[%c0_35, %c0_36] : memref<32x8xf32, #tpu.memory_space<vmem>>, vector<32x8xf32>
      %cst_37 = arith.constant dense<0.000000e+00> : vector<8x8xf32>
      %56 = tpu.matmul %54, %55, %cst_37 {dimension_numbers = #tpu.dot_dimension_numbers<[1], [0], [0], [1], [0, 0, 1, 1], [], []>} : vector<8x32xf32>, vector<32x8xf32>, vector<8x8xf32> -> vector<8x8xf32>
      %57 = vector.extract_strided_slice %21 {offsets = [3, 0], sizes = [1, 8], strides = [1, 1]} : vector<4x32xf32> to vector<1x8xf32>
      %58 = vector.broadcast %57 : vector<1x8xf32> to vector<8x8xf32>
      %59 = arith.addf %56, %58 : vector<8x8xf32>
      %c0_38 = arith.constant 0 : index
      %c0_39 = arith.constant 0 : index
      %60 = vector.load %arg13[%c0_38, %c0_39] : memref<8x8xf32, #tpu.memory_space<vmem>>, vector<8x8xf32>
      tpu.vector_store %arg13[%c0_38, %c0_39], %59 {strides = array<i32>} : memref<8x8xf32, #tpu.memory_space<vmem>>, vector<8x8xf32>,
    } else {
    }
    return
  }
  func.func @transform_0(%arg0: i32, %arg1: i32) -> (i32, i32) {
    %c0_i32 = arith.constant 0 : i32
    %c0_i32_0 = arith.constant 0 : i32
    return %c0_i32, %arg1 : i32, i32
  }
  func.func @transform_1(%arg0: i32, %arg1: i32) -> (i32, i32) {
    %c0_i32 = arith.constant 0 : i32
    %c0_i32_0 = arith.constant 0 : i32
    return %arg1, %c0_i32 : i32, i32
  }
  func.func @transform_2(%arg0: i32, %arg1: i32) -> (i32, i32) {
    %c0_i32 = arith.constant 0 : i32
    %c0_i32_0 = arith.constant 0 : i32
    return %arg0, %c0_i32 : i32, i32
  }
  func.func @transform_3(%arg0: i32, %arg1: i32) -> (i32, i32) {
    %c0_i32 = arith.constant 0 : i32
    %c0_i32_0 = arith.constant 0 : i32
    return %arg0, %c0_i32 : i32, i32
  }
  func.func @transform_4(%arg0: i32, %arg1: i32) -> (i32, i32) {
    %c0_i32 = arith.constant 0 : i32
    %c0_i32_0 = arith.constant 0 : i32
    %c0_i32_1 = arith.constant 0 : i32
    return %c0_i32, %c0_i32_0 : i32, i32
  }
  func.func @transform_5(%arg0: i32, %arg1: i32) -> (i32, i32) {
    %c0_i32 = arith.constant 0 : i32
    %c0_i32_0 = arith.constant 0 : i32
    %c0_i32_1 = arith.constant 0 : i32
    return %c0_i32, %c0_i32_0 : i32, i32
  }
  func.func @transform_6(%arg0: i32, %arg1: i32) -> (i32, i32) {
    %c0_i32 = arith.constant 0 : i32
    %c0_i32_0 = arith.constant 0 : i32
    %c0_i32_1 = arith.constant 0 : i32
    return %c0_i32, %c0_i32_0 : i32, i32
  }
  func.func @transform_7(%arg0: i32, %arg1: i32) -> (i32, i32) {
    %c0_i32 = arith.constant 0 : i32
    %c0_i32_0 = arith.constant 0 : i32
    %c0_i32_1 = arith.constant 0 : i32
    return %c0_i32, %c0_i32_0 : i32, i32
  }
  func.func @transform_8(%arg0: i32, %arg1: i32) -> (i32, i32) {
    %c0_i32 = arith.constant 0 : i32
    %c0_i32_0 = arith.constant 0 : i32
    %c0_i32_1 = arith.constant 0 : i32
    return %c0_i32, %c0_i32_0 : i32, i32
  }
  func.func @transform_9(%arg0: i32, %arg1: i32) -> (i32, i32) {
    %c0_i32 = arith.constant 0 : i32
    %c0_i32_0 = arith.constant 0 : i32
    %c0_i32_1 = arith.constant 0 : i32
    return %c0_i32, %c0_i32_0 : i32, i32
  }
  func.func @transform_10(%arg0: i32, %arg1: i32) -> (i32, i32) {
    %c0_i32 = arith.constant 0 : i32
    %c0_i32_0 = arith.constant 0 : i32
    %c0_i32_1 = arith.constant 0 : i32
    return %c0_i32, %c0_i32_0 : i32, i32
  }
  func.func @transform_11(%arg0: i32, %arg1: i32) -> (i32, i32) {
    %c0_i32 = arith.constant 0 : i32
    %c0_i32_0 = arith.constant 0 : i32
    return %arg0, %c0_i32 : i32, i32
  }
}

</mosaic_0001>

<bundles_post_ra>
// kernel: tpu_custom_call.1
= control target key start
LH: loop header
LB: loop body
LE: loop exit
PB: predicated region body
PF: predicated region fallthrough
CT: control target
= control target key end

     0   :  { %s1420_s17 = smov 0   ;;  %s1422_s18 = smov 0   ;;  %s1578_s0 = inlined_call_operand.vmem [shape: s32[1,128], index: 0, kind: input, shape index: {}]   ;;  %s1579_s1 = inlined_call_operand.vmem [shape: bf16[128,16], index: 1, kind: input, shape index: {}]   ;;  %s1580_s2 = inlined_call_operand.vmem [shape: f32[16,4], index: 2, kind: input, shape index: {}]   ;;  %s1581_s3 = inlined_call_operand.vmem [shape: s32[16,1], index: 3, kind: input, shape index: {}]   ;;  %s1582_s4 = inlined_call_operand.vmem [shape: f32[2,4], index: 4, kind: input, shape index: {}]   ;;  %s1583_s5 = inlined_call_operand.vmem [shape: f32[16,8], index: 5, kind: input, shape index: {}]   ;;  %s1584_s6 = inlined_call_operand.vmem [shape: f32[4,32], index: 6, kind: input, shape index: {}]   ;;  %s1585_s7 = inlined_call_operand.vmem [shape: f32[8,32], index: 7, kind: input, shape index: {}]   ;;  %s1586_s8 = inlined_call_operand.vmem [shape: f32[4,32], index: 8, kind: input, shape index: {}]   ;;  %s1587_s9 = inlined_call_operand.vmem [shape: f32[32,8], index: 9, kind: input, shape index: {}]   ;;  %s1588_s10 = inlined_call_operand.vmem [shape: f32[4,32], index: 10, kind: input, shape index: {}]   ;;  %s1589_s11 = inlined_call_operand.vmem [shape: f32[16,8], index: 11, kind: output, shape index: {}]  }
   0x1   :  { %s1424_s19 = smov 0  }
   0x2 LB: > { %s33_s20 = sadd.s32 1, %s1350_s18  ;;  %p1183_p0 = scmp.ge.s32.totalorder %s1354_s19, 1  ;;  %s1354_s19 = sphi %s1424_s19, %s21_s19   ;;  %s1350_s18 = sphi %s1422_s18, %s1591_s18   ;;  %s1346_s17 = sphi %s1420_s17, %s1590_s17  }
   0x3   : > { %p35_p1 = scmp.ge.s32.totalorder %s33_s20, 2  ;;  %p376_p2 = scmp.lt.s32.totalorder %s1354_s19, 3 }
   0x5   : > { %s1593_s20 = smov (%p35_p1, %s33_s20), 0  ;;  %p377_p3 = pnand %p1183_p0, %p376_p2 }
   0x6   : > { %p435_p4 = scmp.lt.s32.totalorder (!%p377_p3), %s1346_s17, 1  ;;  %s1187_s21 = sshll.u32 (!%p377_p3), %s1346_s17, 3 }
   0x7   : > { %380 = sbr.rel (%p377_p3) target bundleno = 850 (0x352), region = 64 }
   0xc   : > { %v1324_v0 = vld [vmem:[%s1579_s1 + $0x38] sm:$0xff]   ;;  %v1356_v1 = vmov 0.0   ;;  %v1325_v2 = vld [vmem:[%s1579_s1 + $0x30] sm:$0xff]   ;;  %vm1357_vm0 = vmmov 0   ;;  %v1358_v3 = vmov 0   ;;  %v1326_v4 = vld [vmem:[%s1579_s1 + $0x28] sm:$0xff]   ;;  %v455_v8 = vlaneseq }
   0xd   : > { %1237 = vmatprep.subr.bf16.mxu0 %v1356_v1  ;;  %1257 = vmatprep.subr.mxu1 %v1356_v1  ;;  %vm452_vm1 = vcmask 130048   ;;  %s436_s27 = scalar_select %p435_p4, %s1346_s17, 1  ;;  %v1327_v5 = vld [vmem:[%s1579_s1 + $0x20] sm:$0xff]   ;;  %v1328_v7 = vld [vmem:[%s1579_s1 + $0x18] sm:$0xff]   ;;  %v1329_v9 = vld [vmem:[%s1579_s1 + $0x10] sm:$0xff]   ;;  %v457_v11 = vstv %s1187_s21  ;;  %vm680_vm5 = vcmask 1041408  }
   0xe   : > { %1238 = vmatpush3.bf16.msra.mxu0 %v1324_v0  ;;  %1253 = vmatprep.mubr.msk.bf16.mxu0 %vm1357_vm0, %v1356_v1  ;;  %453 = vst.msk [vmem:[#allocation2] sm:$0xff] %vm452_vm1, %v1356_v1  ;;  %v1480_v10 = vshrl.u32 %v455_v8, 7  ;;  %v1330_v12 = vld [vmem:[%s1579_s1 + $0x8] sm:$0xff]   ;;  %v1188_v14 = vld [vmem:[%s1578_s0] ss:$0 sm:$0xff]  ;;  %v667_v28 = vand.u32 127, %v455_v8 }
   0xf   : > { %1239 = vmatprep.subr.bf16.mxu0 %v1356_v1  ;;  %1261 = vmatprep.mubr.msk.f32.mxu1 %vm1357_vm0, %v1356_v1  ;;  %s1461_s28 = sshll.u32 %s436_s27, 3  ;;  %v1331_v15 = vld [vmem:[%s1579_s1] sm:$0xff]   ;;  %v1359_v16 = vmov 1.0|1.0   ;;  %v588_v17 = vld [vmem:[%s1583_s5 + $0x8] sm:$0xff]  ;;  %vm676_vm6 = vcmask 15360  }
  0x10   : > { %1323 = vset.pattern.permute.xlu0 %v1358_v3  ;;  %s442_s14 = scalar_lea.vmem %s1581_s3, %s1461_s28  ;;  %v458_v13 = vadd.s32 %v457_v11, %v1480_v10  ;;  %v587_v18 = vld [vmem:[%s1583_s5] sm:$0xff]  ;;  %1258 = vmatpush3.msra.mxu1 %v588_v17  ;;  %v583_v23 = vsub.s32 0, %v1480_v10  ;;  %v591_v36 = vsub.s32 1, %v1480_v10  ;;  %vm757_vm7 = vcmask 64512   ;;  %s438_s26 = scalar_lea.vmem %s1580_s2, %s1461_s28  ;;  %v996_v46 = vld [vmem:[%s1587_s9 + $0x18] sm:$0xff]  ;;  %v995_v47 = vld [vmem:[%s1587_s9 + $0x10] sm:$0xff] }
  0x11   : > { %v668_v6 = vld [vmem:[%s442_s14] sm:$0xff]  ;;  %1259 = vmatprep.subr.mxu1 %v1356_v1  ;;  %vm835_vm8 = vcmask 1043456   ;;  %vm831_vm9 = vcmask 31744   ;;  %v994_v48 = vld [vmem:[%s1587_s9 + $0x8] sm:$0xff]  ;;  %v989_v52 = vsub.s32 2, %v1480_v10  ;;  %vm1001_vm10 = vcmask 261120  }
  0x12   : > { %1240 = vmatpush3.bf16.msra.mxu0 %v1325_v2  ;;  %670 = vperm.xlu0 %1323, %v668_v6   ;;  %vm464_vm2 = vcmp.eq.s32.totalorder %v458_v13, %v1188_v14  ;;  %v1507_v25 = vld [vmem:[%s1588_s10] sm:$0xf]  ;;  %v999_v62 = vsub.s32 3, %v1480_v10 }
  0x13   : > { %1241 = vmatprep.subr.bf16.mxu0 %v1356_v1  ;;  %vm1198_vm3 = vmpackc.low %vm464_vm2, %vm464_vm2  ;;  %1260 = vmatpush3.msra.mxu1 %v587_v18  ;;  %v584_v27 = vrot.slane %v1507_v25, %v583_v23  ;;  %v675_v33 = vld [vmem:[%s1582_s4] sm:$0x3]  ;;  %v592_v37 = vrot.slane %v1507_v25, %v591_v36  ;;  %v990_v56 = vrot.slane %v1507_v25, %v989_v52 }
  0x14   : > { %1264 = vmatprep.subr.mxu1 %v1356_v1  ;;  %v756_v35 = vld [vmem:[%s1585_s7] sm:$0xff]  ;;  %v1000_v63 = vrot.slane %v1507_v25, %v999_v62 }
  0x15   : > { %v468_v19 = vld [vmem:[#allocation2] sm:$0xff] }
  0x16   : > { %1242 = vmatpush3.bf16.msra.mxu0 %v1326_v4  ;;  %v755_v40 = vld [vmem:[%s1584_s6] sm:$0xf] }
  0x17   : > { %1243 = vmatprep.subr.bf16.mxu0 %v1356_v1  ;;  %v754_v42 = vld [vmem:[%s438_s26] sm:$0xff]  ;;  %s446_s26 = scalar_lea.vmem %s1589_s11, %s1461_s28 }
  0x18   : > { %v909_v44 = vld [vmem:[%s1586_s8] sm:$0xf] }
  0x19   : > { %v993_v49 = vld [vmem:[%s1587_s9] sm:$0xff] }
  0x1a   : > { %1244 = vmatpush3.bf16.msra.mxu0 %v1327_v5 }
  0x1b   : > { %1245 = vmatprep.subr.bf16.mxu0 %v1356_v1 }
  0x1e   : > { %1246 = vmatpush3.bf16.msra.mxu0 %v1328_v7 }
  0x1f   : > { %1247 = vmatprep.subr.bf16.mxu0 %v1356_v1 }
  0x22   : > { %1248 = vmatpush3.bf16.msra.mxu0 %v1329_v9 }
  0x23   : > { %1249 = vmatprep.subr.bf16.mxu0 %v1356_v1 }
  0x26   : > { %1250 = vmatpush3.bf16.msra.mxu0 %v1330_v12 }
  0x27   : > { %1251 = vmatprep.subr.bf16.mxu0 %v1356_v1 }
  0x2a   : > { %1252 = vmatpush3.bf16.msra.mxu0 %v1331_v15 }
  0x2d   : > { %1254 = vmatmul.mubr.msk.bf16.vlgmr.msra.gmra.mxu0 %vm1198_vm3, %v1359_v16 }
  0x8d   : > { %v671_v30 = vpop.permute.xlu0 %670 }
  0x8e   : > { %vm672_vm4 = vcmp.eq.s32.totalorder %v667_v28, %v671_v30 }
  0x8f   : > { %v1201_v34 = vsel %vm672_vm4, 1.0, %v1356_v1 }
  0xed   : > { %v567_v20 = vpop.f32.mrf.mxu0 }
  0xee   : > { %v573_v21 = vadd.f32 %v567_v20, %v468_v19 }
  0xef   : > { %v1255_v22 = vpop.f32.mrf.mxu0 }
  0xf0   : > { %575 = vst.msk [vmem:[#allocation2] sm:$0xff] %vm452_vm1, %v573_v21 }
  0xf1   : > { %v570_v24 = vpop.f32.mrf.mxu0 }
  0xf3   : > { %v1256_v26 = vpop.f32.mrf.mxu0 }
  0xf7   : > { %v580_v29 = vld [vmem:[#allocation2] sm:$0xff] }
  0xf8   : > { %v585_v31 = vadd.f32 %v584_v27, %v580_v29 }
  0xfa   : > { %v586_v32 = vmax.f32 %v585_v31, 0.0 }
  0xfc   : > { %1262 = vmatmul.mubr.msk.f32.vlgmr.msra.gmra.mxu1 %vm452_vm1, %v586_v32 }
  0xfd   : > { %1265 = vmatpush3.msk.msra.mxu1 %vm680_vm5, %v675_v33  ;;  %1266 = vmatprep.mubr.msk.f32.mxu1 %vm1357_vm0, %v1356_v1 }
  0xfe   : > { %1269 = vmatprep.subr.mxu1 %v1356_v1 }
 0x100   : > { %1267 = vmatmul.mubr.msk.f32.vlgmr.msra.gmra.mxu1 %vm676_vm6, %v1201_v34 }
 0x101   : > { %1270 = vmatpush3.msra.mxu1 %v756_v35  ;;  %1271 = vmatprep.mubr.msk.f32.mxu1 %vm1357_vm0, %v1356_v1 }
 0x102   : > { %1274 = vmatprep.subr.mxu1 %v1356_v1 }
 0x1bc   : > { %v662_v38 = vpop.f32.mrf.mxu1 }
 0x1bd   : > { %v663_v39 = vadd.f32 %v662_v38, %v592_v37 }
 0x1be   : > { %v1263_v41 = vpop.f32.mrf.mxu1 }
 0x1bf   : > { %1272 = vmatmul.mubr.msk.f32.vlgmr.msra.gmra.mxu1 %vm757_vm7, %v663_v39 }
 0x1c0   : > { %1275 = vmatpush3.msk.msra.mxu1 %vm835_vm8, %v755_v40  ;;  %1276 = vmatprep.mubr.msk.f32.mxu1 %vm1357_vm0, %v1356_v1  ;;  %v750_v43 = vpop.f32.mrf.mxu1 }
 0x1c1   : > { %1279 = vmatprep.subr.mxu1 %v1356_v1 }
 0x1c2   : > { %v1268_v45 = vpop.f32.mrf.mxu1 }
 0x1c3   : > { %1277 = vmatmul.mubr.msk.f32.vlgmr.msra.gmra.mxu1 %vm831_vm9, %v754_v42 }
 0x1c4   : > { %1280 = vmatpush3.msk.msra.mxu1 %vm835_vm8, %v909_v44  ;;  %1281 = vmatprep.mubr.msk.f32.mxu1 %vm1357_vm0, %v1356_v1 }
 0x1c5   : > { %1284 = vmatprep.subr.mxu1 %v1356_v1 }
 0x1c7   : > { %1282 = vmatmul.mubr.msk.f32.vlgmr.msra.gmra.mxu1 %vm831_vm9, %v750_v43 }
 0x1c8   : > { %1292 = vmatprep.mubr.msk.f32.mxu1 %vm1357_vm0, %v1356_v1  ;;  %1285 = vmatpush3.msra.mxu1 %v996_v46 }
 0x1c9   : > { %1286 = vmatprep.subr.mxu1 %v1356_v1 }
 0x1ca   : > { %1287 = vmatpush3.msra.mxu1 %v995_v47 }
 0x1cb   : > { %1288 = vmatprep.subr.mxu1 %v1356_v1 }
 0x1cc   : > { %1289 = vmatpush3.msra.mxu1 %v994_v48 }
 0x1cd   : > { %1290 = vmatprep.subr.mxu1 %v1356_v1 }
 0x1ce   : > { %1291 = vmatpush3.msra.mxu1 %v993_v49 }
 0x27f   : > { %v827_v50 = vpop.f32.mrf.mxu1 }
 0x281   : > { %v1273_v51 = vpop.f32.mrf.mxu1 }
 0x283   : > { %v905_v53 = vpop.f32.mrf.mxu1 }
 0x284   : > { %v906_v55 = vadd.f32 %v905_v53, %v827_v50 }
 0x285   : > { %v1278_v54 = vpop.f32.mrf.mxu1 }
 0x287   : > { %v982_v57 = vpop.f32.mrf.mxu1 }
 0x288   : > { %v986_v58 = vadd.f32 %v982_v57, %v906_v55 }
 0x289   : > { %v1283_v59 = vpop.f32.mrf.mxu1 }
 0x28a   : > { %v991_v60 = vadd.f32 %v990_v56, %v986_v58 }
 0x28c   : > { %v992_v61 = vmax.f32 %v991_v60, 0.0 }
 0x28e   : > { %1293 = vmatmul.mubr.msk.f32.vlgmr.msra.gmra.mxu1 %vm1001_vm10, %v992_v61 }
 0x34e   : > { %v1071_v0 = vpop.f32.mrf.mxu1 }
 0x34f   : > { %v1072_v1 = vadd.f32 %v1071_v0, %v1000_v63 }
 0x350   : > { %v1294_v2 = vpop.f32.mrf.mxu1 }
 0x351   : > { %1075 = vst.msk [vmem:[%s446_s26] sm:$0xff] %vm757_vm7, %v1072_v1 }
 0x352 PF: > { %s21_s19 = sadd.s32 1, %s1354_s19   ;;  %s1590_s17 = smov %s1350_s18 }
 0x353   : > { %p18_p5 = scmp.ge.s32.totalorder %s21_s19, 4   ;;  %s1591_s18 = smov %s1593_s20 }
 0x355   :  { %20 = sbr.rel (!%p18_p5) target bundleno = 2 (0x2), region = 111 }

</bundles_post_ra>
